<compile_context>
chip_gen: v5e
topology: v5e:2x2
jax: 0.10.0
libtpu: 0.0.40
codegen_flags: <defaults>
</compile_context>

<pallas_src>
import jax
import jax.numpy as jnp
from jax.experimental import pallas as pl
from jax.experimental.pallas import tpu as pltpu


# ----------------------------------------------------------------------------
# Kernel: fused 4-layer MLP with Tanh activations (one batch tile per step)
# ----------------------------------------------------------------------------
def discriminator_kernel(x_ref,
                         w1_ref, b1_ref,
                         w2_ref, b2_ref,
                         w3_ref, b3_ref,
                         w4_ref, b4_ref,
                         o_ref):
    x = x_ref[...].astype(jnp.float32)

    # layer 1: (TB, 166) @ (166, 256) + (1, 256) -> tanh
    h = jnp.dot(x, w1_ref[...], preferred_element_type=jnp.float32)
    h = jnp.tanh(h + b1_ref[...])

    # layer 2: (TB, 256) @ (256, 128) + (1, 128) -> tanh
    h = jnp.dot(h, w2_ref[...], preferred_element_type=jnp.float32)
    h = jnp.tanh(h + b2_ref[...])

    # layer 3: (TB, 128) @ (128, 64) + (1, 64) -> tanh
    h = jnp.dot(h, w3_ref[...], preferred_element_type=jnp.float32)
    h = jnp.tanh(h + b3_ref[...])

    # layer 4 (logits, lane-padded to 128): (TB, 64) @ (64, 128) + (1, 128)
    y = jnp.dot(h, w4_ref[...], preferred_element_type=jnp.float32)
    o_ref[...] = (y + b4_ref[...]).astype(o_ref.dtype)


# ----------------------------------------------------------------------------
# Wrapper
# ----------------------------------------------------------------------------
def _round_up(n, m):
    return ((n + m - 1) // m) * m


def discriminator_forward(x, params):
    """x: (B, ...) flattened to (B, n_input_features). Returns (B, n_classes)."""
    B = x.shape[0]
    x2d = x.reshape(B, -1).astype(jnp.float32)
    f_in = x2d.shape[1]

    w1, b1, w2, b2, w3, b3, w4, b4 = params
    n_classes = w4.shape[0]
    h1, h2, h3 = w1.shape[0], w2.shape[0], w3.shape[0]   # 256, 128, 64

    # PyTorch (out, in) -> (in, out); biases as (1, N) rows.
    w1t = w1.T.astype(jnp.float32)
    w2t = w2.T.astype(jnp.float32)
    w3t = w3.T.astype(jnp.float32)
    b1r = b1.reshape(1, -1).astype(jnp.float32)
    b2r = b2.reshape(1, -1).astype(jnp.float32)
    b3r = b3.reshape(1, -1).astype(jnp.float32)

    # Lane-dense last layer: pad n_classes -> multiple of 128 (>=128).
    out_pad = max(128, _round_up(n_classes, 128))
    w4p = jnp.zeros((h3, out_pad), jnp.float32).at[:, :n_classes].set(
        w4.T.astype(jnp.float32))
    b4p = jnp.zeros((1, out_pad), jnp.float32).at[:, :n_classes].set(
        b4.astype(jnp.float32))

    # Batch tiling: TB multiple of 8 sublanes, up to 256; pad batch to TB mult.
    TB = min(256, _round_up(B, 8))
    B_pad = _round_up(B, TB)
    if B_pad != B:
        x2d = jnp.pad(x2d, ((0, B_pad - B), (0, 0)))
    n_tiles = B_pad // TB

    resident = lambda shape: pl.BlockSpec(shape, lambda i: (0, 0))

    y = pl.pallas_call(
        discriminator_kernel,
        out_shape=jax.ShapeDtypeStruct((B_pad, out_pad), jnp.float32),
        grid=(n_tiles,),
        in_specs=[
            pl.BlockSpec((TB, f_in), lambda i: (i, 0)),
            resident(w1t.shape), resident(b1r.shape),
            resident(w2t.shape), resident(b2r.shape),
            resident(w3t.shape), resident(b3r.shape),
            resident(w4p.shape), resident(b4p.shape),
        ],
        out_specs=pl.BlockSpec((TB, out_pad), lambda i: (i, 0)),
        compiler_params=pltpu.CompilerParams(
            dimension_semantics=("parallel",)),
    )(x2d, w1t, b1r, w2t, b2r, w3t, b3r, w4p, b4p)

    return y[:B, :n_classes]


# ----------------------------------------------------------------------------
# Deterministic parameter init (PyTorch nn.Linear default: U(-1/sqrt(in), +..))
# ----------------------------------------------------------------------------
def init_discriminator_params(key, n_input_features=166, n_classes=2):
    def linear_init(key, out_f, in_f):
        kw, kb = jax.random.split(key)
        bound = 1.0 / jnp.sqrt(in_f)
        w = jax.random.uniform(kw, (out_f, in_f), jnp.float32, -bound, bound)
        b = jax.random.uniform(kb, (out_f,), jnp.float32, -bound, bound)
        return w, b

    k1, k2, k3, k4 = jax.random.split(key, 4)
    w1, b1 = linear_init(k1, 256, n_input_features)
    w2, b2 = linear_init(k2, 128, 256)
    w3, b3 = linear_init(k3, 64, 128)
    w4, b4 = linear_init(k4, n_classes, 64)
    return (w1, b1, w2, b2, w3, b3, w4, b4)


# ----------------------------------------------------------------------------
# Pure-JAX reference for verification
# ----------------------------------------------------------------------------
def discriminator_ref(x, params):
    w1, b1, w2, b2, w3, b3, w4, b4 = params
    h = x.reshape(x.shape[0], -1)
    h = jnp.tanh(h @ w1.T + b1)
    h = jnp.tanh(h @ w2.T + b2)
    h = jnp.tanh(h @ w3.T + b3)
    return h @ w4.T + b4


if __name__ == "__main__":
    # small shapes: batch=4, n_input_features=166 (module default), n_classes=2
    B, n_input_features, n_classes = 4, 166, 2

    key = jax.random.PRNGKey(0)
    kx, kp = jax.random.split(key)
    x = jax.random.normal(kx, (B, n_input_features), dtype=jnp.float32)
    params = init_discriminator_params(kp, n_input_features, n_classes)

    out = discriminator_forward(x, params)
    out = jax.block_until_ready(out)

    ref = discriminator_ref(x, params)
    assert out.shape == (B, n_classes), out.shape
    assert jnp.allclose(out, ref, atol=1e-5, rtol=1e-5), (
        float(jnp.max(jnp.abs(out - ref))))

    print("KERNEL_OK")
</pallas_src>

<mosaic_0001>
module attributes {stable_mosaic.version = 11 : i64} {
  func.func @discriminator_kernel(%arg0: i32, %arg1: memref<8x166xf32, #tpu.memory_space<vmem>>, %arg2: memref<166x256xf32, #tpu.memory_space<vmem>>, %arg3: memref<1x256xf32, #tpu.memory_space<vmem>>, %arg4: memref<256x128xf32, #tpu.memory_space<vmem>>, %arg5: memref<1x128xf32, #tpu.memory_space<vmem>>, %arg6: memref<128x64xf32, #tpu.memory_space<vmem>>, %arg7: memref<1x64xf32, #tpu.memory_space<vmem>>, %arg8: memref<64x128xf32, #tpu.memory_space<vmem>>, %arg9: memref<1x128xf32, #tpu.memory_space<vmem>>, %arg10: memref<8x128xf32, #tpu.memory_space<vmem>>) attributes {dimension_semantics = [#tpu.dimension_semantics<parallel>], iteration_bounds = array<i64: 1>, scalar_prefetch = 0 : i64, scratch_operands = 0 : i64, tpu.core_type = #tpu.core_type<tc>, window_params = [{transform_indices = @transform_0, window_bounds = array<i64: 8, 166>}, {pipeline_mode = #tpu.pipeline_mode<synchronous>, transform_indices = @transform_1, window_bounds = array<i64: 166, 256>}, {pipeline_mode = #tpu.pipeline_mode<synchronous>, transform_indices = @transform_2, window_bounds = array<i64: 1, 256>}, {pipeline_mode = #tpu.pipeline_mode<synchronous>, transform_indices = @transform_3, window_bounds = array<i64: 256, 128>}, {pipeline_mode = #tpu.pipeline_mode<synchronous>, transform_indices = @transform_4, window_bounds = array<i64: 1, 128>}, {pipeline_mode = #tpu.pipeline_mode<synchronous>, transform_indices = @transform_5, window_bounds = array<i64: 128, 64>}, {pipeline_mode = #tpu.pipeline_mode<synchronous>, transform_indices = @transform_6, window_bounds = array<i64: 1, 64>}, {pipeline_mode = #tpu.pipeline_mode<synchronous>, transform_indices = @transform_7, window_bounds = array<i64: 64, 128>}, {pipeline_mode = #tpu.pipeline_mode<synchronous>, transform_indices = @transform_8, window_bounds = array<i64: 1, 128>}, {transform_indices = @transform_9, window_bounds = array<i64: 8, 128>}]} {
    %c0 = arith.constant 0 : index
    %c0_0 = arith.constant 0 : index
    %0 = vector.load %arg1[%c0, %c0_0] : memref<8x166xf32, #tpu.memory_space<vmem>>, vector<8x166xf32>
    %c0_1 = arith.constant 0 : index
    %c0_2 = arith.constant 0 : index
    %1 = vector.load %arg2[%c0_1, %c0_2] : memref<166x256xf32, #tpu.memory_space<vmem>>, vector<166x256xf32>
    %cst = arith.constant dense<0.000000e+00> : vector<8x256xf32>
    %2 = tpu.matmul %0, %1, %cst {dimension_numbers = #tpu.dot_dimension_numbers<[1], [0], [0], [1], [0, 0, 1, 1], [], []>} : vector<8x166xf32>, vector<166x256xf32>, vector<8x256xf32> -> vector<8x256xf32>
    %c0_3 = arith.constant 0 : index
    %c0_4 = arith.constant 0 : index
    %3 = vector.load %arg3[%c0_3, %c0_4] : memref<1x256xf32, #tpu.memory_space<vmem>>, vector<1x256xf32>
    %4 = vector.broadcast %3 : vector<1x256xf32> to vector<8x256xf32>
    %5 = arith.addf %2, %4 : vector<8x256xf32>
    %6 = math.tanh %5 : vector<8x256xf32>
    %c0_5 = arith.constant 0 : index
    %c0_6 = arith.constant 0 : index
    %7 = vector.load %arg4[%c0_5, %c0_6] : memref<256x128xf32, #tpu.memory_space<vmem>>, vector<256x128xf32>
    %cst_7 = arith.constant dense<0.000000e+00> : vector<8x128xf32>
    %8 = tpu.matmul %6, %7, %cst_7 {dimension_numbers = #tpu.dot_dimension_numbers<[1], [0], [0], [1], [0, 0, 1, 1], [], []>} : vector<8x256xf32>, vector<256x128xf32>, vector<8x128xf32> -> vector<8x128xf32>
    %c0_8 = arith.constant 0 : index
    %c0_9 = arith.constant 0 : index
    %9 = vector.load %arg5[%c0_8, %c0_9] : memref<1x128xf32, #tpu.memory_space<vmem>>, vector<1x128xf32>
    %10 = vector.broadcast %9 : vector<1x128xf32> to vector<8x128xf32>
    %11 = arith.addf %8, %10 : vector<8x128xf32>
    %12 = math.tanh %11 : vector<8x128xf32>
    %c0_10 = arith.constant 0 : index
    %c0_11 = arith.constant 0 : index
    %13 = vector.load %arg6[%c0_10, %c0_11] : memref<128x64xf32, #tpu.memory_space<vmem>>, vector<128x64xf32>
    %cst_12 = arith.constant dense<0.000000e+00> : vector<8x64xf32>
    %14 = tpu.matmul %12, %13, %cst_12 {dimension_numbers = #tpu.dot_dimension_numbers<[1], [0], [0], [1], [0, 0, 1, 1], [], []>} : vector<8x128xf32>, vector<128x64xf32>, vector<8x64xf32> -> vector<8x64xf32>
    %c0_13 = arith.constant 0 : index
    %c0_14 = arith.constant 0 : index
    %15 = vector.load %arg7[%c0_13, %c0_14] : memref<1x64xf32, #tpu.memory_space<vmem>>, vector<1x64xf32>
    %16 = vector.broadcast %15 : vector<1x64xf32> to vector<8x64xf32>
    %17 = arith.addf %14, %16 : vector<8x64xf32>
    %18 = math.tanh %17 : vector<8x64xf32>
    %c0_15 = arith.constant 0 : index
    %c0_16 = arith.constant 0 : index
    %19 = vector.load %arg8[%c0_15, %c0_16] : memref<64x128xf32, #tpu.memory_space<vmem>>, vector<64x128xf32>
    %cst_17 = arith.constant dense<0.000000e+00> : vector<8x128xf32>
    %20 = tpu.matmul %18, %19, %cst_17 {dimension_numbers = #tpu.dot_dimension_numbers<[1], [0], [0], [1], [0, 0, 1, 1], [], []>} : vector<8x64xf32>, vector<64x128xf32>, vector<8x128xf32> -> vector<8x128xf32>
    %c0_18 = arith.constant 0 : index
    %c0_19 = arith.constant 0 : index
    %21 = vector.load %arg9[%c0_18, %c0_19] : memref<1x128xf32, #tpu.memory_space<vmem>>, vector<1x128xf32>
    %22 = vector.broadcast %21 : vector<1x128xf32> to vector<8x128xf32>
    %23 = arith.addf %20, %22 : vector<8x128xf32>
    %c0_20 = arith.constant 0 : index
    %c0_21 = arith.constant 0 : index
    %24 = vector.load %arg10[%c0_20, %c0_21] : memref<8x128xf32, #tpu.memory_space<vmem>>, vector<8x128xf32>
    tpu.vector_store %arg10[%c0_20, %c0_21], %23 {strides = array<i32>} : memref<8x128xf32, #tpu.memory_space<vmem>>, vector<8x128xf32>,
    return
  }
  func.func @transform_0(%arg0: i32) -> (i32, i32) {
    %c0_i32 = arith.constant 0 : i32
    %c0_i32_0 = arith.constant 0 : i32
    return %arg0, %c0_i32 : i32, i32
  }
  func.func @transform_1(%arg0: i32) -> (i32, i32) {
    %c0_i32 = arith.constant 0 : i32
    %c0_i32_0 = arith.constant 0 : i32
    %c0_i32_1 = arith.constant 0 : i32
    return %c0_i32, %c0_i32_0 : i32, i32
  }
  func.func @transform_2(%arg0: i32) -> (i32, i32) {
    %c0_i32 = arith.constant 0 : i32
    %c0_i32_0 = arith.constant 0 : i32
    %c0_i32_1 = arith.constant 0 : i32
    return %c0_i32, %c0_i32_0 : i32, i32
  }
  func.func @transform_3(%arg0: i32) -> (i32, i32) {
    %c0_i32 = arith.constant 0 : i32
    %c0_i32_0 = arith.constant 0 : i32
    %c0_i32_1 = arith.constant 0 : i32
    return %c0_i32, %c0_i32_0 : i32, i32
  }
  func.func @transform_4(%arg0: i32) -> (i32, i32) {
    %c0_i32 = arith.constant 0 : i32
    %c0_i32_0 = arith.constant 0 : i32
    %c0_i32_1 = arith.constant 0 : i32
    return %c0_i32, %c0_i32_0 : i32, i32
  }
  func.func @transform_5(%arg0: i32) -> (i32, i32) {
    %c0_i32 = arith.constant 0 : i32
    %c0_i32_0 = arith.constant 0 : i32
    %c0_i32_1 = arith.constant 0 : i32
    return %c0_i32, %c0_i32_0 : i32, i32
  }
  func.func @transform_6(%arg0: i32) -> (i32, i32) {
    %c0_i32 = arith.constant 0 : i32
    %c0_i32_0 = arith.constant 0 : i32
    %c0_i32_1 = arith.constant 0 : i32
    return %c0_i32, %c0_i32_0 : i32, i32
  }
  func.func @transform_7(%arg0: i32) -> (i32, i32) {
    %c0_i32 = arith.constant 0 : i32
    %c0_i32_0 = arith.constant 0 : i32
    %c0_i32_1 = arith.constant 0 : i32
    return %c0_i32, %c0_i32_0 : i32, i32
  }
  func.func @transform_8(%arg0: i32) -> (i32, i32) {
    %c0_i32 = arith.constant 0 : i32
    %c0_i32_0 = arith.constant 0 : i32
    %c0_i32_1 = arith.constant 0 : i32
    return %c0_i32, %c0_i32_0 : i32, i32
  }
  func.func @transform_9(%arg0: i32) -> (i32, i32) {
    %c0_i32 = arith.constant 0 : i32
    %c0_i32_0 = arith.constant 0 : i32
    return %arg0, %c0_i32 : i32, i32
  }
}

</mosaic_0001>

<bundles_post_ra>
// kernel: tpu_custom_call.1
= control target key start
LH: loop header
LB: loop body
LE: loop exit
PB: predicated region body
PF: predicated region fallthrough
CT: control target
= control target key end

     0   :  { %14 = vsyncpa [#allocation3], 0  ;;  %s642_s0 = inlined_call_operand.vmem [shape: f32[8,166], index: 0, kind: input, shape index: {}]   ;;  %s643_s1 = inlined_call_operand.hbm [shape: f32[166,256], index: 1, kind: input, shape index: {}]   ;;  %s644_s2 = inlined_call_operand.vmem [shape: f32[1,256], index: 2, kind: input, shape index: {}]   ;;  %s645_s3 = inlined_call_operand.hbm [shape: f32[256,128], index: 3, kind: input, shape index: {}]   ;;  %s646_s4 = inlined_call_operand.vmem [shape: f32[1,128], index: 4, kind: input, shape index: {}]   ;;  %s647_s5 = inlined_call_operand.vmem [shape: f32[128,64], index: 5, kind: input, shape index: {}]   ;;  %s648_s6 = inlined_call_operand.vmem [shape: f32[1,64], index: 6, kind: input, shape index: {}]   ;;  %s649_s7 = inlined_call_operand.vmem [shape: f32[64,128], index: 7, kind: input, shape index: {}]   ;;  %s650_s8 = inlined_call_operand.vmem [shape: f32[1,128], index: 8, kind: input, shape index: {}]   ;;  %s651_s9 = inlined_call_operand.hbm [shape: f32[8,128], index: 9, kind: output, shape index: {}]  }
   0x1   :  { %15 = vsyncpa [#allocation6], 0 }
   0x2   :  { %16 = vsyncpa [#allocation4], 0  ;;  %s23_s11 = sshll.u32 %s643_s1, 4  ;;  %s482_s12 = smov [#allocation2]   ;;  %s24_s11 = int_to_ptr.hbm [resolvable:$true] %s23_s11 }
   0x3   :  { %s25_s13 = sshll.u32 %s482_s12, 4  ;;  %s38_s16 = sshll.u32 %s645_s3, 4  ;;  %s26_s13 = int_to_ptr.vmem [resolvable:$true] %s25_s13  ;;  %s39_s16 = int_to_ptr.hbm [resolvable:$true] %s38_s16 }
   0x4   :  { %s483_s17 = smov 256   ;;  %s484_s18 = smov 16  }
   0x5   :  { %31 = dma.hbm_to_vmem [thread:$0]  %s24_s11, 5376, %s26_s13, [#allocation3], %s483_s17, %s483_s17, %s484_s18  }
   0x6   :  { %s485_s19 = smov [#allocation5]   ;;  %s486_s21 = smov 128  }
   0x7   :  { %s40_s20 = sshll.u32 %s485_s19, 4  ;;  %s487_s22 = smov 8   ;;  %s41_s20 = int_to_ptr.vmem [resolvable:$true] %s40_s20 }
   0x8   :  { %46 = dma.hbm_to_vmem [thread:$0]  %s39_s16, 4096, %s41_s20, [#allocation6], %s486_s21, %s486_s21, %s487_s22  }
   0x9   :  { %476 = dma.done.wait [#allocation3], 5376  }
   0xa   :  { %477 = vsyncadd [#allocation3], 4294961920 }
   0xb   :  { %478 = dma.done.wait [#allocation6], 4096  }
   0xc   :  { %479 = vsyncadd [#allocation6], 4294963200  ;;  %v98_v0 = vld [vmem:[#allocation2 + $0xf8] sm:$0xff]  ;;  %v96_v1 = vld [vmem:[#allocation2 + $0xe8] sm:$0xff]  ;;  %vm119_vm0 = vcmask 1045504   ;;  %vm115_vm1 = vcmask 310272  }
   0xd   :  { %166 = vmatpush.msra.mxu2 %v98_v0  ;;  %v97_v2 = vld [vmem:[#allocation2 + $0xf0] sm:$0xff]  ;;  %v94_v3 = vld [vmem:[#allocation2 + $0xd8] sm:$0xff]  ;;  %v95_v4 = vld [vmem:[#allocation2 + $0xe0] sm:$0xff]  ;;  %vm338_vm2 = vcmask 523264   ;;  %s488_s28 = smov [#allocation7]   ;;  %s370_s10 = sshll.u32 %s651_s9, 4  ;;  %s371_s10 = int_to_ptr.hbm [resolvable:$true] %s370_s10 }
   0xe   :  { %126 = vmatpush.msra.mxu0 %v97_v2  ;;  %v93_v5 = vld [vmem:[#allocation2 + $0xd0] sm:$0xff]  ;;  %v92_v6 = vld [vmem:[#allocation2 + $0xc8] sm:$0xff]  ;;  %v91_v7 = vld [vmem:[#allocation2 + $0xc0] sm:$0xff]  ;;  %s368_s29 = sshll.u32 %s488_s28, 4  ;;  %s369_s29 = int_to_ptr.vmem [resolvable:$true] %s368_s29 }
   0xf   :  { %167 = vmatpush.msra.mxu2 %v96_v1  ;;  %v90_v8 = vld [vmem:[#allocation2 + $0xb8] sm:$0xff]  ;;  %v89_v9 = vld [vmem:[#allocation2 + $0xb0] sm:$0xff]  ;;  %v108_v10 = vld [vmem:[#allocation2 + $0x148] sm:$0x3f] }
  0x10   :  { %127 = vmatpush.msra.mxu0 %v95_v4  ;;  %v88_v11 = vld [vmem:[#allocation2 + $0xa8] sm:$0xff]  ;;  %383 = vmatpush.msk.msra.mxu3 %vm119_vm0, %v108_v10  ;;  %v106_v12 = vld [vmem:[#allocation2 + $0x138] sm:$0xff]  ;;  %v87_v13 = vld [vmem:[#allocation2 + $0xa0] sm:$0xff] }
  0x11   :  { %168 = vmatpush.msra.mxu2 %v94_v3  ;;  %v104_v14 = vld [vmem:[#allocation2 + $0x128] sm:$0xff]  ;;  %v86_v15 = vld [vmem:[#allocation2 + $0x98] sm:$0xff]  ;;  %v85_v16 = vld [vmem:[#allocation2 + $0x90] sm:$0xff] }
  0x12   :  { %128 = vmatpush.msra.mxu0 %v93_v5  ;;  %198 = vmatpush.msra.mxu3 %v106_v12  ;;  %v102_v17 = vld [vmem:[#allocation2 + $0x118] sm:$0xff]  ;;  %v84_v18 = vld [vmem:[#allocation2 + $0x88] sm:$0xff]  ;;  %v107_v19 = vld [vmem:[#allocation2 + $0x140] sm:$0x3f] }
  0x13   :  { %169 = vmatpush.msra.mxu2 %v92_v6  ;;  %v105_v20 = vld [vmem:[#allocation2 + $0x130] sm:$0xff]  ;;  %v83_v21 = vld [vmem:[#allocation2 + $0x80] sm:$0xff]  ;;  %v100_v22 = vld [vmem:[#allocation2 + $0x108] sm:$0xff]  ;;  %381 = vmatpush.msk.msra.mxu1 %vm119_vm0, %v107_v19 }
  0x14   :  { %129 = vmatpush.msra.mxu0 %v91_v7  ;;  %199 = vmatpush.msra.mxu3 %v104_v14  ;;  %v82_v23 = vld [vmem:[#allocation2 + $0x78] sm:$0xff]  ;;  %v66_v24 = vld [vmem:[%s642_s0 + $0x8] sm:$0xff]  ;;  %v81_v25 = vld [vmem:[#allocation2 + $0x70] sm:$0xff] }
  0x15   :  { %170 = vmatpush.msra.mxu2 %v90_v8  ;;  %158 = vmatpush.msra.mxu1 %v105_v20  ;;  %v103_v26 = vld [vmem:[#allocation2 + $0x120] sm:$0xff]  ;;  %v80_v27 = vld [vmem:[#allocation2 + $0x68] sm:$0xff]  ;;  %v101_v30 = vld [vmem:[#allocation2 + $0x110] sm:$0xff] }
  0x16   :  { %130 = vmatpush.msra.mxu0 %v89_v9  ;;  %200 = vmatpush.msra.mxu3 %v102_v17  ;;  %v239_v28 = vld [vmem:[#allocation5 + $0xf8] sm:$0xff]  ;;  %v79_v29 = vld [vmem:[#allocation2 + $0x60] sm:$0xff]  ;;  %v78_v31 = vld [vmem:[#allocation2 + $0x58] sm:$0xff] }
  0x17   :  { %171 = vmatpush.msra.mxu2 %v88_v11  ;;  %159 = vmatpush.msra.mxu1 %v103_v26  ;;  %v238_v32 = vld [vmem:[#allocation5 + $0xf0] sm:$0xff]  ;;  %v77_v33 = vld [vmem:[#allocation2 + $0x50] sm:$0xff]  ;;  %v76_v35 = vld [vmem:[#allocation2 + $0x48] sm:$0xff] }
  0x18   :  { %131 = vmatpush.msra.mxu0 %v87_v13  ;;  %201 = vmatpush.msra.mxu3 %v100_v22  ;;  %v99_v34 = vld [vmem:[#allocation2 + $0x100] sm:$0xff]  ;;  %v223_v37 = vld [vmem:[#allocation5 + $0x78] sm:$0xff]  ;;  %v74_v38 = vld [vmem:[#allocation2 + $0x38] sm:$0xff] }
  0x19   :  { %172 = vmatpush.msra.mxu2 %v86_v15  ;;  %384 = vmatmul.msk.f32.vlgmr.msra.gmra.mxu3 %vm115_vm1, %v66_v24  ;;  %v75_v36 = vld [vmem:[#allocation2 + $0x40] sm:$0xff]  ;;  %v237_v39 = vld [vmem:[#allocation5 + $0xe8] sm:$0xff]  ;;  %v73_v40 = vld [vmem:[#allocation2 + $0x30] sm:$0xff] }
  0x1a   :  { %132 = vmatpush.msra.mxu0 %v85_v16  ;;  %264 = vmatpush.msrb.mxu3 %v239_v28  ;;  %v222_v41 = vld [vmem:[#allocation5 + $0x70] sm:$0xff]  ;;  %v72_v42 = vld [vmem:[#allocation2 + $0x28] sm:$0xff]  ;;  %v236_v43 = vld [vmem:[#allocation5 + $0xe0] sm:$0xff] }
  0x1b   :  { %173 = vmatpush.msra.mxu2 %v84_v18  ;;  %160 = vmatpush.msra.mxu1 %v101_v30  ;;  %v71_v44 = vld [vmem:[#allocation2 + $0x20] sm:$0xff]  ;;  %v221_v45 = vld [vmem:[#allocation5 + $0x68] sm:$0xff]  ;;  %v235_v47 = vld [vmem:[#allocation5 + $0xd8] sm:$0xff] }
  0x1c   :  { %133 = vmatpush.msra.mxu0 %v83_v21  ;;  %265 = vmatpush.msrb.mxu3 %v238_v32  ;;  %v70_v46 = vld [vmem:[#allocation2 + $0x18] sm:$0xff]  ;;  %v69_v48 = vld [vmem:[#allocation2 + $0x10] sm:$0xff]  ;;  %v68_v50 = vld [vmem:[#allocation2 + $0x8] sm:$0xff] }
  0x1d   :  { %174 = vmatpush.msra.mxu2 %v82_v23  ;;  %161 = vmatpush.msra.mxu1 %v99_v34  ;;  %v220_v49 = vld [vmem:[#allocation5 + $0x60] sm:$0xff]  ;;  %v234_v51 = vld [vmem:[#allocation5 + $0xd0] sm:$0xff]  ;;  %v219_v54 = vld [vmem:[#allocation5 + $0x58] sm:$0xff] }
  0x1e   :  { %134 = vmatpush.msra.mxu0 %v81_v25  ;;  %382 = vmatmul.msk.f32.vlgmr.msra.gmra.mxu1 %vm115_vm1, %v66_v24  ;;  %v65_v52 = vld [vmem:[%s642_s0] sm:$0xff]  ;;  %v233_v55 = vld [vmem:[#allocation5 + $0xc8] sm:$0xff]  ;;  %v232_v57 = vld [vmem:[#allocation5 + $0xc0] sm:$0xff] }
  0x1f   :  { %175 = vmatpush.msra.mxu2 %v80_v27  ;;  %244 = vmatpush.msrb.mxu1 %v223_v37  ;;  %v67_v53 = vld [vmem:[#allocation2] sm:$0xff]  ;;  %v217_v58 = vld [vmem:[#allocation5 + $0x48] sm:$0xff]  ;;  %v231_v59 = vld [vmem:[#allocation5 + $0xb8] sm:$0xff] }
  0x20   :  { %135 = vmatpush.msra.mxu0 %v79_v29  ;;  %266 = vmatpush.msrb.mxu3 %v237_v39  ;;  %v218_v56 = vld [vmem:[#allocation5 + $0x50] sm:$0xff]  ;;  %v216_v60 = vld [vmem:[#allocation5 + $0x40] sm:$0xff]  ;;  %v215_v62 = vld [vmem:[#allocation5 + $0x38] sm:$0xff] }
  0x21   :  { %176 = vmatpush.msra.mxu2 %v78_v31  ;;  %245 = vmatpush.msrb.mxu1 %v222_v41  ;;  %v230_v61 = vld [vmem:[#allocation5 + $0xb0] sm:$0xff]  ;;  %v229_v63 = vld [vmem:[#allocation5 + $0xa8] sm:$0xff]  ;;  %v228_v1 = vld [vmem:[#allocation5 + $0xa0] sm:$0xff] }
  0x22   :  { %136 = vmatpush.msra.mxu0 %v77_v33  ;;  %267 = vmatpush.msrb.mxu3 %v236_v43  ;;  %v214_v0 = vld [vmem:[#allocation5 + $0x30] sm:$0xff]  ;;  %v213_v2 = vld [vmem:[#allocation5 + $0x28] sm:$0xff]  ;;  %v227_v3 = vld [vmem:[#allocation5 + $0x98] sm:$0xff] }
  0x23   :  { %177 = vmatpush.msra.mxu2 %v76_v35  ;;  %246 = vmatpush.msrb.mxu1 %v221_v45  ;;  %v212_v4 = vld [vmem:[#allocation5 + $0x20] sm:$0xff]  ;;  %v226_v5 = vld [vmem:[#allocation5 + $0x90] sm:$0xff]  ;;  %v211_v6 = vld [vmem:[#allocation5 + $0x18] sm:$0xff] }
  0x24   :  { %137 = vmatpush.msra.mxu0 %v75_v36  ;;  %268 = vmatpush.msrb.mxu3 %v235_v47  ;;  %v225_v7 = vld [vmem:[#allocation5 + $0x88] sm:$0xff]  ;;  %v210_v8 = vld [vmem:[#allocation5 + $0x10] sm:$0xff]  ;;  %v224_v9 = vld [vmem:[#allocation5 + $0x80] sm:$0xff] }
  0x25   :  { %178 = vmatpush.msra.mxu2 %v74_v38  ;;  %247 = vmatpush.msrb.mxu1 %v220_v49  ;;  %v209_v10 = vld [vmem:[#allocation5 + $0x8] sm:$0xff]  ;;  %v208_v11 = vld [vmem:[#allocation5] sm:$0xff]  ;;  %v298_v14 = vld [vmem:[%s647_s5 + $0x68] sm:$0xff] }
  0x26   :  { %138 = vmatpush.msra.mxu0 %v73_v40  ;;  %269 = vmatpush.msrb.mxu3 %v234_v51  ;;  %v300_v12 = vld [vmem:[%s647_s5 + $0x78] sm:$0xff]  ;;  %v299_v13 = vld [vmem:[%s647_s5 + $0x70] sm:$0xff]  ;;  %v297_v15 = vld [vmem:[%s647_s5 + $0x60] sm:$0xff] }
  0x27   :  { %179 = vmatpush.msra.mxu2 %v72_v42  ;;  %248 = vmatpush.msrb.mxu1 %v219_v54  ;;  %v296_v16 = vld [vmem:[%s647_s5 + $0x58] sm:$0xff]  ;;  %v295_v17 = vld [vmem:[%s647_s5 + $0x50] sm:$0xff]  ;;  %v294_v18 = vld [vmem:[%s647_s5 + $0x48] sm:$0xff] }
  0x28   :  { %139 = vmatpush.msra.mxu0 %v71_v44  ;;  %270 = vmatpush.msrb.mxu3 %v233_v55  ;;  %v109_v19 = vld [vmem:[%s644_s2] sm:$0x3]  ;;  %v292_v22 = vld [vmem:[%s647_s5 + $0x38] sm:$0xff]  ;;  %v291_v26 = vld [vmem:[%s647_s5 + $0x30] sm:$0xff] }
  0x29   :  { %180 = vmatpush.msra.mxu2 %v70_v46  ;;  %249 = vmatpush.msrb.mxu1 %v218_v56  ;;  %v111_v20 = vperm.slane %v109_v19, 0  ;;  %v293_v21 = vld [vmem:[%s647_s5 + $0x40] sm:$0xff]  ;;  %v112_v27 = vperm.slane %v109_v19, 1  ;;  %v290_v35 = vld [vmem:[%s647_s5 + $0x28] sm:$0xff]  ;;  %v288_v37 = vld [vmem:[%s647_s5 + $0x18] sm:$0xff] }
  0x2a   :  { %140 = vmatpush.msra.mxu0 %v69_v48  ;;  %271 = vmatpush.msrb.mxu3 %v232_v57  ;;  %v289_v36 = vld [vmem:[%s647_s5 + $0x20] sm:$0xff]  ;;  %v287_v38 = vld [vmem:[%s647_s5 + $0x10] sm:$0xff]  ;;  %v286_v39 = vld [vmem:[%s647_s5 + $0x8] sm:$0xff] }
  0x2b   :  { %181 = vmatpush.msra.mxu2 %v68_v50  ;;  %250 = vmatpush.msrb.mxu1 %v217_v58  ;;  %v285_v40 = vld [vmem:[%s647_s5] sm:$0xff]  ;;  %v333_v41 = vld [vmem:[%s649_s7 + $0x38] sm:$0xff]  ;;  %v332_v42 = vld [vmem:[%s649_s7 + $0x30] sm:$0xff] }
  0x2c   :  { %182 = vmatmul.f32.vlgmr.msra.gmra.mxu2 %v65_v52  ;;  %141 = vmatpush.msra.mxu0 %v67_v53  ;;  %v331_v43 = vld [vmem:[%s649_s7 + $0x28] sm:$0xff]  ;;  %v393_v44 = vld [vmem:[%s646_s4] ss:$0 sm:$0xff]  ;;  %v329_v51 = vld [vmem:[%s649_s7 + $0x18] sm:$0xff] }
  0x2d   :  { %142 = vmatmul.f32.vlgmr.msra.gmra.mxu0 %v65_v52  ;;  %272 = vmatpush.msrb.mxu3 %v231_v59  ;;  %v330_v50 = vld [vmem:[%s649_s7 + $0x20] sm:$0xff]  ;;  %v328_v52 = vld [vmem:[%s649_s7 + $0x10] sm:$0xff]  ;;  %v327_v53 = vld [vmem:[%s649_s7 + $0x8] sm:$0xff] }
  0x2e   :  { %251 = vmatpush.msrb.mxu1 %v216_v60  ;;  %305 = vmatpush.msrb.mxu0 %v300_v12  ;;  %v326_v54 = vld [vmem:[%s649_s7] sm:$0xff] }
  0x2f   :  { %273 = vmatpush.msrb.mxu3 %v230_v61  ;;  %350 = vmatpush.msrb.mxu2 %v333_v41  ;;  %v394_v55 = vld [vmem:[%s648_s6] ss:$0 sm:$0xff] }
  0x30   :  { %252 = vmatpush.msrb.mxu1 %v215_v62  ;;  %306 = vmatpush.msrb.mxu0 %v299_v13  ;;  %v395_v59 = vld [vmem:[%s650_s8] ss:$0 sm:$0xff] }
  0x31   :  { %274 = vmatpush.msrb.mxu3 %v229_v63  ;;  %351 = vmatpush.msrb.mxu2 %v332_v42 }
  0x32   :  { %253 = vmatpush.msrb.mxu1 %v214_v0  ;;  %307 = vmatpush.msrb.mxu0 %v298_v14 }
  0x33   :  { %275 = vmatpush.msrb.mxu3 %v228_v1  ;;  %352 = vmatpush.msrb.mxu2 %v331_v43 }
  0x34   :  { %254 = vmatpush.msrb.mxu1 %v213_v2  ;;  %308 = vmatpush.msrb.mxu0 %v297_v15 }
  0x35   :  { %276 = vmatpush.msrb.mxu3 %v227_v3  ;;  %353 = vmatpush.msrb.mxu2 %v330_v50 }
  0x36   :  { %255 = vmatpush.msrb.mxu1 %v212_v4  ;;  %309 = vmatpush.msrb.mxu0 %v296_v16 }
  0x37   :  { %277 = vmatpush.msrb.mxu3 %v226_v5  ;;  %354 = vmatpush.msrb.mxu2 %v329_v51 }
  0x38   :  { %256 = vmatpush.msrb.mxu1 %v211_v6  ;;  %310 = vmatpush.msrb.mxu0 %v295_v17 }
  0x39   :  { %278 = vmatpush.msrb.mxu3 %v225_v7  ;;  %355 = vmatpush.msrb.mxu2 %v328_v52 }
  0x3a   :  { %257 = vmatpush.msrb.mxu1 %v210_v8  ;;  %311 = vmatpush.msrb.mxu0 %v294_v18 }
  0x3b   :  { %279 = vmatpush.msrb.mxu3 %v224_v9  ;;  %356 = vmatpush.msrb.mxu2 %v327_v53 }
  0x3c   :  { %258 = vmatpush.msrb.mxu1 %v209_v10  ;;  %312 = vmatpush.msrb.mxu0 %v293_v21 }
  0x3d   :  { %357 = vmatpush.msrb.mxu2 %v326_v54 }
  0x3e   :  { %259 = vmatpush.msrb.mxu1 %v208_v11  ;;  %313 = vmatpush.msrb.mxu0 %v292_v22 }
  0x40   :  { %314 = vmatpush.msrb.mxu0 %v291_v26 }
  0x42   :  { %315 = vmatpush.msrb.mxu0 %v290_v35 }
  0x44   :  { %316 = vmatpush.msrb.mxu0 %v289_v36 }
  0x46   :  { %317 = vmatpush.msrb.mxu0 %v288_v37 }
  0x48   :  { %318 = vmatpush.msrb.mxu0 %v287_v38 }
  0x4a   :  { %319 = vmatpush.msrb.mxu0 %v286_v39 }
  0x4c   :  { %320 = vmatpush.msrb.mxu0 %v285_v40 }
  0x9b   :  { %v163_v24 = vpop.f32.mrf.mxu1 }
  0x9c   :  { %v203_v30 = vpop.f32.mrf.mxu3 }
  0xaa   :  { %v143_v23 = vpop.f32.mrf.mxu0 }
  0xab   :  { %v144_v25 = vadd.f32 %v143_v23, %v111_v20 }
  0xad   :  { %v164_v28 = vadd.f32 %v163_v24, %v144_v25 }
  0xaf   :  { %v183_v29 = vpop.f32.mrf.mxu2  ;;  %396 = vtanh.f32 %v164_v28 }
  0xb0   :  { %v184_v31 = vadd.f32 %v183_v29, %v112_v27 }
  0xb2   :  { %v204_v32 = vadd.f32 %v203_v30, %v184_v31 }
  0xb4   :  { %398 = vtanh.f32 %v204_v32 }
  0xb5   :  { %v397_v33 = vpop.eup %396 }
  0xb6   :  { %260 = vmatmul.f32.vlgmr.msrb.gmra.mxu1 %v397_v33 }
  0xba   :  { %v399_v34 = vpop.eup %398 }
  0xbb   :  { %280 = vmatmul.f32.vlgmr.msrb.gmra.mxu3 %v399_v34 }
 0x133   :  { %v261_v45 = vpop.f32.mrf.mxu1 }
 0x134   :  { %v262_v46 = vadd.f32 %v393_v44, %v261_v45 }
 0x13e   :  { %v281_v47 = vpop.f32.mrf.mxu3 }
 0x13f   :  { %v282_v48 = vadd.f32 %v281_v47, %v262_v46 }
 0x141   :  { %400 = vtanh.f32 %v282_v48 }
 0x147   :  { %v401_v49 = vpop.eup %400 }
 0x148   :  { %321 = vmatmul.f32.vlgmr.msrb.gmra.mxu0 %v401_v49 }
 0x1c5   :  { %v322_v56 = vpop.f32.mrf.mxu0 }
 0x1c6   :  { %v323_v57 = vadd.f32 %v394_v55, %v322_v56 }
 0x1c8   :  { %402 = vtanh.f32 %v323_v57 }
 0x1ce   :  { %v403_v58 = vpop.eup %402 }
 0x1cf   :  { %385 = vmatmul.msk.f32.vlgmr.msrb.gmra.mxu2 %vm338_vm2, %v403_v58 }
 0x252   :  { %v359_v60 = vpop.f32.mrf.mxu2 }
 0x253   :  { %v360_v61 = vadd.f32 %v395_v59, %v359_v60 }
 0x255   :  { %362 = vst [vmem:[#allocation7] sm:$0xff] %v360_v61 }
 0x256   :  { %373 = dma.vmem_to_hbm [thread:$0]  %s369_s29, 128, %s371_s10, [#allocation4]  }
 0x257   :  { %480 = dma.done.wait [#allocation4], 128  }
 0x258   :  { %481 = vsyncadd [#allocation4], 4294967168 }
 0x259   :  { %378 = vsyncpa [#allocation3], 1 }
 0x25a   :  { %379 = vsyncpa [#allocation6], 1 }
 0x25b   :  { %380 = vsyncpa [#allocation4], 1 }

</bundles_post_ra>
